<compile_context>
chip_gen: v5e
topology: v5e:2x2
jax: 0.10.0
libtpu: 0.0.40
codegen_flags: <defaults>
</compile_context>

<pallas_src>
import functools
import math

import jax
import jax.numpy as jnp
from jax import lax
from jax.experimental import pallas as pl
from jax.experimental.pallas import tpu as pltpu


def _alignment_kernel(block_b, len_a_ref, len_b_ref, temp_ref,
                      a_ref, b_ref, fa_ref, fb_ref):
    off = pl.program_id(0) * block_b
    temp = temp_ref[0]                       # f32 scalar from SMEM
    La = a_ref.shape[1]
    Lb = b_ref.shape[1]

    # Narrow validity iotas, shared by every batch in the block.
    row_ids = lax.broadcasted_iota(jnp.int32, (La, 1), 0)     # [La, 1]
    col_ids = lax.broadcasted_iota(jnp.int32, (1, Lb), 1)     # [1, Lb]

    for i in range(block_b):                 # static unroll over the batch tile
        a = a_ref[i]                         # [La, H]  (native input dtype)
        b = b_ref[i]                         # [Lb, H]
        la = len_a_ref[off + i]              # int32 scalars (SMEM prefetch)
        lb = len_b_ref[off + i]

        # bf16 MXU operands, cast in-kernel (cheap VPU, hides under the MXU).
        a_bf = a.astype(jnp.bfloat16)
        b_bf = b.astype(jnp.bfloat16)
        # Fold temperature into the attention LHS: O(La*H) instead of O(La*Lb).
        a_scaled = (a.astype(jnp.float32) * temp).astype(jnp.bfloat16)

        # attn = (a * T) @ b^T — contract the native last dims (no XLU transpose).
        attn = lax.dot_general(a_scaled, b_bf, (((1,), (1,)), ((), ())),
                               preferred_element_type=jnp.float32)   # [La, Lb] f32

        # Padding mask from per-batch lengths via narrow broadcast compares.
        attn = jnp.where(row_ids < la, attn, -10000000.0)
        attn = jnp.where(col_ids < lb, attn, -10000000.0)

        # softmax over La (torch dim=1), per-column max shift. Fully masked
        # columns come out uniform 1/La automatically (matches the reference).
        m_col = jnp.max(attn, axis=0, keepdims=True)                 # [1, Lb]
        e_col = jnp.exp(attn - m_col)
        attn_a = e_col * pl.reciprocal(
            jnp.sum(e_col, axis=0, keepdims=True), approx=True)
        # feature_b = attn_a^T @ a — contract the La dims directly.
        fb_ref[i] = lax.dot_general(
            attn_a.astype(jnp.bfloat16), a_bf, (((0,), (0,)), ((), ())),
            preferred_element_type=jnp.float32).astype(fb_ref.dtype)

        # softmax over Lb (torch dim=2), per-row max shift.
        m_row = jnp.max(attn, axis=1, keepdims=True)                 # [La, 1]
        e_row = jnp.exp(attn - m_row)
        attn_b = e_row * pl.reciprocal(
            jnp.sum(e_row, axis=1, keepdims=True), approx=True)
        # feature_a = attn_b @ b
        fa_ref[i] = lax.dot_general(
            attn_b.astype(jnp.bfloat16), b_bf, (((1,), (0,)), ((), ())),
            preferred_element_type=jnp.float32).astype(fa_ref.dtype)


def _vmem_limit_bytes():
    cap = 64 * 1024 * 1024               # conservative fallback (v7x per-core)
    try:
        cap = int(pltpu.get_tpu_info().vmem_capacity_bytes)
    except Exception:
        pass
    # ~40 MiB on v7x (64 MiB physical), ~104 MiB on v5e/v6e (128 MiB physical).
    return int(min(max(cap - 24 * 1024 * 1024, 32 * 1024 * 1024),
                   112 * 1024 * 1024))


def _choose_block_b(B, La, Lb, H, in_bytes, out_bytes, vmem_limit):
    per_batch = (
        2 * (La + Lb) * H * in_bytes        # double-buffered input blocks
        + 2 * (La + Lb) * H * out_bytes     # double-buffered output blocks
        + 4 * La * Lb * 4                   # f32 attn / exp / softmax temporaries
        + 3 * (La + Lb) * H * 2             # bf16 MXU operand copies
    )
    budget = max(vmem_limit // 2, 1)        # headroom for compiler scratch
    bt = int(max(1, min(B, budget // max(per_batch, 1), 8)))
    if B >= 2:                              # keep >=2 grid steps (v7x dual-TC)
        bt = min(bt, max(1, B // 2))
    while B % bt:                           # full blocks only
        bt -= 1
    return bt


def alignment_lengths_forward(a, b, len_a, len_b, temperature, out_dtype=None):
    """a:[B,La,H], b:[B,Lb,H], len_a/len_b:[B] int32 valid lengths."""
    B, La, H = a.shape
    _, Lb, _ = b.shape
    out_dtype = a.dtype if out_dtype is None else jnp.dtype(out_dtype)

    vmem_limit = _vmem_limit_bytes()
    bt = _choose_block_b(B, La, Lb, H, jnp.dtype(a.dtype).itemsize,
                         jnp.dtype(out_dtype).itemsize, vmem_limit)
    grid = (B // bt,)

    temp_arr = jnp.asarray(temperature, dtype=jnp.float32).reshape((1,))

    cost = pl.CostEstimate(
        flops=6 * B * La * Lb * H,                       # three MXU matmuls
        transcendentals=2 * B * La * Lb,                 # two exps
        bytes_accessed=(B * (La + Lb) * H
                        * (jnp.dtype(a.dtype).itemsize + out_dtype.itemsize)),
    )

    kernel = pl.pallas_call(
        functools.partial(_alignment_kernel, bt),
        grid_spec=pltpu.PrefetchScalarGridSpec(
            num_scalar_prefetch=3,                       # len_a, len_b, temperature
            grid=grid,
            in_specs=[
                pl.BlockSpec((bt, La, H), lambda i, la, lb, t: (i, 0, 0)),   # a
                pl.BlockSpec((bt, Lb, H), lambda i, la, lb, t: (i, 0, 0)),   # b
            ],
            out_specs=[
                pl.BlockSpec((bt, La, H), lambda i, la, lb, t: (i, 0, 0)),   # feature_a
                pl.BlockSpec((bt, Lb, H), lambda i, la, lb, t: (i, 0, 0)),   # feature_b
            ],
        ),
        out_shape=[
            jax.ShapeDtypeStruct((B, La, H), out_dtype),
            jax.ShapeDtypeStruct((B, Lb, H), out_dtype),
        ],
        compiler_params=pltpu.CompilerParams(
            dimension_semantics=("parallel",),
            vmem_limit_bytes=vmem_limit,
        ),
        cost_estimate=cost,
    )
    feature_a, feature_b = kernel(len_a.astype(jnp.int32),
                                  len_b.astype(jnp.int32), temp_arr, a, b)
    return feature_a, feature_b


def alignment_forward(a, b, mask_a, mask_b, temperature):
    """Matches Alignment.forward. mask_a:[B,La,1], mask_b:[B,Lb,1] are 0/1
    padding masks (contiguous valid prefixes — the standard usage); they are
    reduced to per-batch lengths and the mask_a @ mask_b^T outer-product mask
    is rebuilt in-kernel from those lengths.
    TODO(synk): non-contiguous masks would need a dense-mask kernel variant."""
    len_a = jnp.sum(mask_a[..., 0] != 0, axis=-1).astype(jnp.int32)
    len_b = jnp.sum(mask_b[..., 0] != 0, axis=-1).astype(jnp.int32)
    return alignment_lengths_forward(a, b, len_a, len_b, temperature)


def _reference(a, b, mask_a, mask_b, temperature):
    attn = jnp.einsum("bld,bmd->blm", a, b) * temperature
    mask = jnp.einsum("blk,bmk->blm", mask_a, mask_b) != 0.0
    attn = jnp.where(mask, attn, -10000000.0)
    attn_a = jax.nn.softmax(attn, axis=1)
    attn_b = jax.nn.softmax(attn, axis=2)
    feature_b = jnp.einsum("blm,bld->bmd", attn_a, a)
    feature_a = jnp.einsum("blm,bmd->bld", attn_b, b)
    return feature_a, feature_b


if __name__ == "__main__":
    B, La, Lb, H = 2, 8, 8, 32
    temperature = 1.0 / math.sqrt(H)   # nn.Parameter init value

    key = jax.random.PRNGKey(0)
    ka, kb = jax.random.split(key)
    a = jax.random.normal(ka, (B, La, H), dtype=jnp.float32)
    b = jax.random.normal(kb, (B, Lb, H), dtype=jnp.float32)

    # deterministic 0/1 padding masks (variable lengths per batch)
    len_a = jnp.array([6, 8])
    len_b = jnp.array([8, 5])
    mask_a = (jnp.arange(La)[None, :] < len_a[:, None]).astype(jnp.float32)[:, :, None]
    mask_b = (jnp.arange(Lb)[None, :] < len_b[:, None]).astype(jnp.float32)[:, :, None]

    fa, fb = alignment_forward(a, b, mask_a, mask_b, temperature)
    jax.block_until_ready((fa, fb))

    ra, rb = _reference(a, b, mask_a, mask_b, temperature)
    # bf16 MXU operands (f32 accumulation) + approx reciprocals -> looser tol
    assert jnp.allclose(fa, ra, atol=5e-2, rtol=5e-2), float(jnp.max(jnp.abs(fa - ra)))
    assert jnp.allclose(fb, rb, atol=5e-2, rtol=5e-2), float(jnp.max(jnp.abs(fb - rb)))

    print("KERNEL_OK")
</pallas_src>

<mosaic_0001>
module attributes {stable_mosaic.version = 11 : i64} {
  func.func @_alignment_kernel(%arg0: i32, %arg1: memref<2xi32, #tpu.memory_space<smem>>, %arg2: memref<2xi32, #tpu.memory_space<smem>>, %arg3: memref<1xf32, #tpu.memory_space<smem>>, %arg4: memref<1x8x32xf32, #tpu.memory_space<vmem>>, %arg5: memref<1x8x32xf32, #tpu.memory_space<vmem>>, %arg6: memref<1x8x32xf32, #tpu.memory_space<vmem>>, %arg7: memref<1x8x32xf32, #tpu.memory_space<vmem>>) attributes {dimension_semantics = [#tpu.dimension_semantics<parallel>], iteration_bounds = array<i64: 2>, scalar_prefetch = 3 : i64, scratch_operands = 0 : i64, tpu.core_type = #tpu.core_type<tc>, window_params = [{transform_indices = @transform_0, window_bounds = array<i64: 1, 8, 32>}, {transform_indices = @transform_1, window_bounds = array<i64: 1, 8, 32>}, {transform_indices = @transform_2, window_bounds = array<i64: 1, 8, 32>}, {transform_indices = @transform_3, window_bounds = array<i64: 1, 8, 32>}]} {
    %c1_i32 = arith.constant 1 : i32
    %0 = arith.muli %arg0, %c1_i32 : i32
    %c0 = arith.constant 0 : index
    %1 = memref.load %arg3[%c0] : memref<1xf32, #tpu.memory_space<smem>>
    %2 = tpu.iota {dimensions = array<i32: 0>} : vector<8x1xi32>
    %3 = tpu.iota {dimensions = array<i32: 1>} : vector<1x8xi32>
    %c0_0 = arith.constant 0 : index
    %c0_1 = arith.constant 0 : index
    %c0_2 = arith.constant 0 : index
    %4 = vector.load %arg4[%c0_0, %c0_1, %c0_2] : memref<1x8x32xf32, #tpu.memory_space<vmem>>, vector<1x8x32xf32>
    %5 = vector.shape_cast %4 : vector<1x8x32xf32> to vector<8x32xf32>
    %c0_3 = arith.constant 0 : index
    %c0_4 = arith.constant 0 : index
    %c0_5 = arith.constant 0 : index
    %6 = vector.load %arg5[%c0_3, %c0_4, %c0_5] : memref<1x8x32xf32, #tpu.memory_space<vmem>>, vector<1x8x32xf32>
    %7 = vector.shape_cast %6 : vector<1x8x32xf32> to vector<8x32xf32>
    %c0_i32 = arith.constant 0 : i32
    %8 = arith.addi %0, %c0_i32 : i32
    %9 = arith.index_cast %8 : i32 to index
    %10 = memref.load %arg1[%9] : memref<2xi32, #tpu.memory_space<smem>>
    %c0_i32_6 = arith.constant 0 : i32
    %11 = arith.addi %0, %c0_i32_6 : i32
    %12 = arith.index_cast %11 : i32 to index
    %13 = memref.load %arg2[%12] : memref<2xi32, #tpu.memory_space<smem>>
    %14 = arith.truncf %5 : vector<8x32xf32> to vector<8x32xbf16>
    %15 = arith.truncf %7 : vector<8x32xf32> to vector<8x32xbf16>
    %16 = vector.broadcast %1 : f32 to vector<8x32xf32>
    %17 = arith.mulf %5, %16 : vector<8x32xf32>
    %18 = arith.truncf %17 : vector<8x32xf32> to vector<8x32xbf16>
    %cst = arith.constant dense<0.000000e+00> : vector<8x8xf32>
    %19 = tpu.matmul %18, %15, %cst {dimension_numbers = #tpu.dot_dimension_numbers<[1], [1], [0], [0], [0, 0, 1, 0], [], []>} : vector<8x32xbf16>, vector<8x32xbf16>, vector<8x8xf32> -> vector<8x8xf32>
    %20 = vector.broadcast %10 : i32 to vector<8x1xi32>
    %21 = arith.cmpi slt, %2, %20 : vector<8x1xi32>
    %cst_7 = arith.constant -1.000000e+07 : f32
    %22 = vector.shape_cast %21 : vector<8x1xi1> to vector<8x1xi1>
    %23 = vector.broadcast %22 : vector<8x1xi1> to vector<8x8xi1>
    %24 = vector.broadcast %cst_7 : f32 to vector<8x8xf32>
    %25 = arith.select %23, %19, %24 : vector<8x8xi1>, vector<8x8xf32>
    %26 = vector.broadcast %13 : i32 to vector<1x8xi32>
    %27 = arith.cmpi slt, %3, %26 : vector<1x8xi32>
    %cst_8 = arith.constant -1.000000e+07 : f32
    %28 = vector.shape_cast %27 : vector<1x8xi1> to vector<1x8xi1>
    %29 = vector.broadcast %28 : vector<1x8xi1> to vector<8x8xi1>
    %30 = vector.broadcast %cst_8 : f32 to vector<8x8xf32>
    %31 = arith.select %29, %25, %30 : vector<8x8xi1>, vector<8x8xf32>
    %cst_9 = arith.constant dense<0xFF800000> : vector<8xf32>
    %32 = vector.multi_reduction <maximumf>, %31, %cst_9 [0] : vector<8x8xf32> to vector<8xf32>
    %33 = vector.shape_cast %32 : vector<8xf32> to vector<1x8xf32>
    %34 = vector.broadcast %33 : vector<1x8xf32> to vector<8x8xf32>
    %35 = arith.subf %31, %34 : vector<8x8xf32>
    %36 = math.exp %35 : vector<8x8xf32>
    %cst_10 = arith.constant dense<0.000000e+00> : vector<8xf32>
    %37 = vector.multi_reduction <add>, %36, %cst_10 [0] : vector<8x8xf32> to vector<8xf32>
    %38 = vector.shape_cast %37 : vector<8xf32> to vector<1x8xf32>
    %39 = tpu.reciprocal %38 {approx = true} : vector<1x8xf32> -> vector<1x8xf32>
    %40 = vector.broadcast %39 : vector<1x8xf32> to vector<8x8xf32>
    %41 = arith.mulf %36, %40 : vector<8x8xf32>
    %42 = arith.truncf %41 : vector<8x8xf32> to vector<8x8xbf16>
    %cst_11 = arith.constant dense<0.000000e+00> : vector<8x32xf32>
    %43 = tpu.matmul %42, %14, %cst_11 {dimension_numbers = #tpu.dot_dimension_numbers<[0], [0], [1], [1], [0, 1, 1, 1], [], []>} : vector<8x8xbf16>, vector<8x32xbf16>, vector<8x32xf32> -> vector<8x32xf32>
    %c0_12 = arith.constant 0 : index
    %c0_13 = arith.constant 0 : index
    %c0_14 = arith.constant 0 : index
    %44 = vector.load %arg7[%c0_12, %c0_13, %c0_14] : memref<1x8x32xf32, #tpu.memory_space<vmem>>, vector<1x8x32xf32>
    %45 = vector.shape_cast %44 : vector<1x8x32xf32> to vector<8x32xf32>
    %46 = vector.shape_cast %43 : vector<8x32xf32> to vector<1x8x32xf32>
    tpu.vector_store %arg7[%c0_12, %c0_13, %c0_14], %46 {strides = array<i32>} : memref<1x8x32xf32, #tpu.memory_space<vmem>>, vector<1x8x32xf32>,
    %cst_15 = arith.constant dense<0xFF800000> : vector<8xf32>
    %47 = vector.multi_reduction <maximumf>, %31, %cst_15 [1] : vector<8x8xf32> to vector<8xf32>
    %48 = vector.shape_cast %47 : vector<8xf32> to vector<8x1xf32>
    %49 = vector.broadcast %48 : vector<8x1xf32> to vector<8x8xf32>
    %50 = arith.subf %31, %49 : vector<8x8xf32>
    %51 = math.exp %50 : vector<8x8xf32>
    %cst_16 = arith.constant dense<0.000000e+00> : vector<8xf32>
    %52 = vector.multi_reduction <add>, %51, %cst_16 [1] : vector<8x8xf32> to vector<8xf32>
    %53 = vector.shape_cast %52 : vector<8xf32> to vector<8x1xf32>
    %54 = tpu.reciprocal %53 {approx = true} : vector<8x1xf32> -> vector<8x1xf32>
    %55 = vector.broadcast %54 : vector<8x1xf32> to vector<8x8xf32>
    %56 = arith.mulf %51, %55 : vector<8x8xf32>
    %57 = arith.truncf %56 : vector<8x8xf32> to vector<8x8xbf16>
    %cst_17 = arith.constant dense<0.000000e+00> : vector<8x32xf32>
    %58 = tpu.matmul %57, %15, %cst_17 {dimension_numbers = #tpu.dot_dimension_numbers<[1], [0], [0], [1], [0, 0, 1, 1], [], []>} : vector<8x8xbf16>, vector<8x32xbf16>, vector<8x32xf32> -> vector<8x32xf32>
    %c0_18 = arith.constant 0 : index
    %c0_19 = arith.constant 0 : index
    %c0_20 = arith.constant 0 : index
    %59 = vector.load %arg6[%c0_18, %c0_19, %c0_20] : memref<1x8x32xf32, #tpu.memory_space<vmem>>, vector<1x8x32xf32>
    %60 = vector.shape_cast %59 : vector<1x8x32xf32> to vector<8x32xf32>
    %61 = vector.shape_cast %58 : vector<8x32xf32> to vector<1x8x32xf32>
    tpu.vector_store %arg6[%c0_18, %c0_19, %c0_20], %61 {strides = array<i32>} : memref<1x8x32xf32, #tpu.memory_space<vmem>>, vector<1x8x32xf32>,
    return
  }
  func.func @transform_0(%arg0: i32, %arg1: memref<2xi32, #tpu.memory_space<smem>>, %arg2: memref<2xi32, #tpu.memory_space<smem>>, %arg3: memref<1xf32, #tpu.memory_space<smem>>) -> (i32, i32, i32) {
    %c0_i32 = arith.constant 0 : i32
    %c0_i32_0 = arith.constant 0 : i32
    %c0_i32_1 = arith.constant 0 : i32
    return %arg0, %c0_i32, %c0_i32_0 : i32, i32, i32
  }
  func.func @transform_1(%arg0: i32, %arg1: memref<2xi32, #tpu.memory_space<smem>>, %arg2: memref<2xi32, #tpu.memory_space<smem>>, %arg3: memref<1xf32, #tpu.memory_space<smem>>) -> (i32, i32, i32) {
    %c0_i32 = arith.constant 0 : i32
    %c0_i32_0 = arith.constant 0 : i32
    %c0_i32_1 = arith.constant 0 : i32
    return %arg0, %c0_i32, %c0_i32_0 : i32, i32, i32
  }
  func.func @transform_2(%arg0: i32, %arg1: memref<2xi32, #tpu.memory_space<smem>>, %arg2: memref<2xi32, #tpu.memory_space<smem>>, %arg3: memref<1xf32, #tpu.memory_space<smem>>) -> (i32, i32, i32) {
    %c0_i32 = arith.constant 0 : i32
    %c0_i32_0 = arith.constant 0 : i32
    %c0_i32_1 = arith.constant 0 : i32
    return %arg0, %c0_i32, %c0_i32_0 : i32, i32, i32
  }
  func.func @transform_3(%arg0: i32, %arg1: memref<2xi32, #tpu.memory_space<smem>>, %arg2: memref<2xi32, #tpu.memory_space<smem>>, %arg3: memref<1xf32, #tpu.memory_space<smem>>) -> (i32, i32, i32) {
    %c0_i32 = arith.constant 0 : i32
    %c0_i32_0 = arith.constant 0 : i32
    %c0_i32_1 = arith.constant 0 : i32
    return %arg0, %c0_i32, %c0_i32_0 : i32, i32, i32
  }
}

</mosaic_0001>

<bundles_post_ra>
// kernel: tpu_custom_call.1
= control target key start
LH: loop header
LB: loop body
LE: loop exit
PB: predicated region body
PF: predicated region fallthrough
CT: control target
= control target key end

     0   :  { %s827_s27 = smov [#allocation3]   ;;  %s828_s28 = smov [#allocation4]   ;;  %s1064_s0 = inlined_call_operand.vmem [shape: s32[2], index: 0, kind: input, shape index: {}]   ;;  %s1065_s3 = inlined_call_operand.hbm [shape: f32[2,8,32], index: 3, kind: input, shape index: {}]   ;;  %s1066_s4 = inlined_call_operand.hbm [shape: f32[2,8,32], index: 4, kind: input, shape index: {}]   ;;  %s1067_s5 = inlined_call_operand.hbm [shape: f32[2,8,32], index: 5, kind: output, shape index: {0}]   ;;  %s1068_s6 = inlined_call_operand.hbm [shape: f32[2,8,32], index: 6, kind: output, shape index: {1}]   ;;  %s1069_s1 = inlined_call_operand.vmem [shape: s32[2], index: 1, kind: input, shape index: {}]   ;;  %s1070_s2 = inlined_call_operand.<no memory space> [shape: f32[1], index: 2, kind: input, shape index: {}]  }
   0x1   :  { %s13_s23 = sshll.u32 %s1064_s0, 4  ;;  %s18_s26 = sshll.u32 %s1069_s1, 4  ;;  %s14_s23 = int_to_ptr.vmem [resolvable:$true] %s13_s23  ;;  %s19_s26 = int_to_ptr.vmem [resolvable:$true] %s18_s26 }
   0x2   :  { %16 = dma.vmem_to_smem %s14_s23, 16, %s827_s27, [#allocation2] }
   0x3   :  { %21 = dma.vmem_to_smem %s19_s26, 16, %s828_s28, [#allocation2] }
   0x4   :  { %22 = sst [smem:[#allocation5]] %s1070_s2 }
   0x5   :  { %793 = dma.done.wait [#allocation2], 32 }
   0x6   :  { %794 = vsyncadd [#allocation2], 4294967264 }
   0x7   :  { %25 = sfence }
   0x8   :  { %26 = vsyncpa [#allocation7], 0 }
   0x9   :  { %28 = vsyncpa [#allocation7 + $0x1], 0 }
   0xa   :  { %29 = vsyncpa [#allocation10], 0 }
   0xb   :  { %31 = vsyncpa [#allocation10 + $0x1], 0 }
   0xc   :  { %32 = vsyncpa [#allocation8], 0 }
   0xd   :  { %34 = vsyncpa [#allocation8 + $0x1], 0 }
   0xe   :  { %35 = vsyncpa [#allocation13], 0 }
   0xf   :  { %37 = vsyncpa [#allocation13 + $0x1], 0  ;;  %s873_s0 = smov 0   ;;  %s875_s1 = smov 0  }
  0x10   :  { %s877_s7 = smov 0   ;;  %s879_s8 = smov 0  }
  0x11 LB: > { %s894_s2 = sadd.s32 4294967295, %s825_s8   ;;  %s549_s9 = sadd.s32 4294967294, %s825_s8   ;;  %s825_s8 = sphi %s879_s8, %s1081_s8   ;;  %s821_s7 = sphi %s877_s7, %s1080_s7   ;;  %s817_s1 = sphi %s875_s1, %s1079_s1   ;;  %s813_s0 = sphi %s873_s0, %s1078_s0  }
  0x12   : > { %s898_s10 = sadd.s32 1, %s825_s8   ;;  %s50_s11 = sadd.s32 1, %s821_s7 }
  0x13   : > { %s47_s12 = ssub.s32 %s825_s8, %s898_s10  ;;  %p57_p0 = scmp.ne.s32.totalorder %s821_s7, %s817_s1 }
  0x14   : > { %p48_p1 = scmp.eq.s32.totalorder %s47_s12, 0  ;;  %p58_p2 = scmp.eq.s32.totalorder %s825_s8, 0 }
  0x15   : > { %p63_p3 = scmp.ne.s32.totalorder %s817_s1, %s813_s0  ;;  %p64_p4 = scmp.eq.s32.totalorder %s894_s2, 0 }
  0x16   : > { %s910_s13 = scalar_select %p48_p1, %s821_s7, %s50_s11  }
  0x17   : > { %p912_p5 = por %p58_p2, %p57_p0  ;;  %p916_p6 = por %p64_p4, %p63_p3 }
  0x18   : > { %p113_p7 = scmp.eq.s32.totalorder %s894_s2, 1  ;;  %p119_p8 = scmp.eq.s32.totalorder %s549_s9, 1 }
  0x19   : > { %p592_p10 = scmp.lt.s32.totalorder %s825_s8, 2  ;;  %s932_s18 = sand.u32 1, %s821_s7  }
  0x1a   : > { %p923_p11 = por %p113_p7, %p57_p0  ;;  %p927_p12 = por %p119_p8, %p63_p3 }
  0x1b   : > { %s553_s19 = sshll.u32 %s825_s8, 3  ;;  %s552_s20 = sshll.u32 %s932_s18, 3 }
  0x1c   : > { %s173_s23 = scalar_lea.hbm %s1065_s3, %s553_s19  ;;  %s169_s25 = scalar_lea.vmem [#allocation6], %s552_s20 }
  0x1d   : > { %s175_s24 = sshll.u32 %s173_s23, 4  ;;  %s177_s26 = sshll.u32 %s169_s25, 4  ;;  %s176_s24 = int_to_ptr.hbm [resolvable:$true] %s175_s24  ;;  %s178_s26 = int_to_ptr.vmem [resolvable:$true] %s177_s26 }
  0x1e   : > { %p941_p13 = pnand %p592_p10, %p912_p5  ;;  %p556_p0 = scmp.ge.s32.totalorder %s825_s8, 1 }
  0x1f   : > { %p201_p1 = scmp.lt.s32.totalorder %s825_s8, 3  ;;  %s166_s28 = scalar_lea.sflag [#allocation7], %s932_s18 }
  0x20   : > { %s661_s29 = sshra.s32 %s176_s24, 4  ;;  %p665_p3 = pneg %p941_p13  ;;  %s662_s29 = int_to_ptr.hbm [resolvable:$true] %s661_s29 }
  0x21   : > { %s663_s30 = scalar_lea.hbm %s662_s29, 8  ;;  %s668_s12 = scalar_lea.hbm %s1065_s3, 16 }
  0x22   : > { %p664_p2 = scmp.ne.s32.totalorder %s662_s29, %s663_s30  ;;  %p669_p5 = scmp.lt.s32.totalorder %s662_s29, %s1065_s3 }
  0x23   : > { %p670_p8 = scmp.lt.s32.totalorder %s668_s12, %s663_s30 }
  0x24   : > { %p666_p4 = pnand %p665_p3, %p664_p2 }
  0x25   : > { %p671_p10 = por %p670_p8, %p669_p5 }
  0x26   : > { %p667_p7 = pneg %p666_p4 }
  0x28   : > { %p672_p9 = pnand %p671_p10, %p667_p7 }
  0x2a   : > { %675 = shalt.err (!%p672_p9)
}
  0x2b   : > { %581 = dma.hbm_to_vmem [thread:$0]  (!%p941_p13), %s176_s24, 128, %s178_s26, %s166_s28  }
  0x2c   : > { %p965_p2 = pnand %p556_p0, %p201_p1  ;;  %s192_s29 = scalar_lea.hbm %s1066_s4, %s553_s19 }
  0x2d   : > { %s194_s30 = sshll.u32 %s192_s29, 4  ;;  %s188_s9 = scalar_lea.vmem [#allocation9], %s552_s20  ;;  %s195_s30 = int_to_ptr.hbm [resolvable:$true] %s194_s30 }
  0x2e   : > { %s196_s11 = sshll.u32 %s188_s9, 4  ;;  %s185_s12 = scalar_lea.sflag [#allocation10], %s932_s18  ;;  %s197_s11 = int_to_ptr.vmem [resolvable:$true] %s196_s11 }
  0x2f   : > { %s691_s14 = sshra.s32 %s195_s30, 4  ;;  %s698_s28 = scalar_lea.hbm %s1066_s4, 16  ;;  %s692_s14 = int_to_ptr.hbm [resolvable:$true] %s691_s14 }
  0x30   : > { %s693_s21 = scalar_lea.hbm %s692_s14, 8  ;;  %p699_p4 = scmp.lt.s32.totalorder %s692_s14, %s1066_s4 }
  0x31   : > { %p694_p9 = scmp.ne.s32.totalorder %s692_s14, %s693_s21  ;;  %p700_p7 = scmp.lt.s32.totalorder %s698_s28, %s693_s21 }
  0x33   : > { %p696_p0 = pnand %p694_p9, %p665_p3  ;;  %p701_p5 = por %p700_p7, %p699_p4 }
  0x35   : > { %p697_p1 = pneg %p696_p0 }
  0x37   : > { %p702_p8 = pnand %p701_p5, %p697_p1 }
  0x39   : > { %705 = shalt.err (!%p702_p8)
}
  0x3a   : > { %584 = dma.hbm_to_vmem [thread:$0]  (!%p941_p13), %s195_s30, 128, %s197_s11, %s185_s12  }
  0x3b   : > { %205 = sbr.rel (%p965_p2) target bundleno = 602 (0x25a), region = 28  ;;  %s987_s18 = sand.u32 (!%p965_p2), 1, %s817_s1  }
  0x3c   : > { %s990_s20 = sshll.u32 (!%p965_p2), %s987_s18, 3  ;;  %s208_s25 = scalar_lea.sflag (!%p965_p2), [#allocation7], %s987_s18 }
  0x3d   : > { %s211_s29 = scalar_lea.vmem (!%p965_p2), [#allocation6], %s990_s20 }
  0x40   : > { %796 = dma.done.wait (%p916_p6), %s208_s25, 128  }
  0x41   : > { %798 = vsyncadd (%p916_p6), %s208_s25, 4294967168  ;;  %s218_s27 = scalar_lea.sflag [#allocation10], %s987_s18  ;;  %s221_s22 = scalar_lea.vmem [#allocation9], %s990_s20 }
  0x42   : > { %800 = dma.done.wait (%p916_p6), %s218_s27, 128  }
  0x43   : > { %802 = vsyncadd (%p916_p6), %s218_s27, 4294967168  ;;  %s256_s30 = sld [smem:[#allocation5]]  ;;  %v262_v0 = vld [vmem:[%s221_s22] sm:$0xff]  ;;  %vm270_vm0 = vcmask 261120   ;;  %v261_v1 = vld [vmem:[%s211_s29] sm:$0xff]  ;;  %v257_v7 = vlaneseq  ;;  %vm300_vm3 = vcmask 64512  }
  0x44   : > { %v266_v3 = vpack.c.bf16 %v262_v0, %v262_v0  ;;  %s263_s9 = sld [smem:[#allocation3 + %s894_s2]]  ;;  %v265_v41 = vpack.c.bf16 %v261_v1, %v261_v1  ;;  %vm340_vm4 = vcmask 1043456   ;;  %s566_s15 = sshll.u32 %s894_s2, 3 }
  0x45   : > { %s264_s11 = sld [smem:[#allocation4 + %s894_s2]]  ;;  %v258_v8 = vshrl.u32 %v257_v7, 7  ;;  %v260_v9 = vand.u32 127, %v257_v7  ;;  %s418_s21 = scalar_lea.hbm %s1068_s6, %s566_s15 }
  0x46   : > { %v275_v4 = vsel %vm270_vm0, %v266_v3, 0  ;;  %v372_v42 = vsel %vm340_vm4, %v266_v3, 0  ;;  %v342_v43 = vsel %vm340_vm4, %v265_v41, 0  ;;  %s254_s24 = scalar_lea.vmem [#allocation12], %s990_s20  ;;  %s422_s28 = sshll.u32 %s418_s21, 4  ;;  %s423_s28 = int_to_ptr.hbm [resolvable:$true] %s422_s28 }
  0x47   : > { %284 = vmatpush.bf16.xpose.msra.mxu0 %v275_v4  ;;  %381 = vmatpush.bf16.msra.mxu2 %v372_v42  ;;  %s420_s26 = sshll.u32 %s254_s24, 4  ;;  %s394_s23 = scalar_lea.sflag [#allocation13], %s987_s18  ;;  %s421_s26 = int_to_ptr.vmem [resolvable:$true] %s420_s26 }
  0x48   : > { %351 = vmatpush.bf16.msra.mxu1 %v342_v43  ;;  %s735_s19 = sshra.s32 %s423_s28, 4  ;;  %s741_s27 = scalar_lea.hbm %s1068_s6, 16  ;;  %s736_s19 = int_to_ptr.hbm [resolvable:$true] %s735_s19 }
  0x49   : > { %v267_v2 = vstv %s256_s30  ;;  %s737_s25 = scalar_lea.hbm %s736_s19, 8  ;;  %p742_p10 = scmp.lt.s32.totalorder %s736_s19, %s1068_s6 }
  0x4a   : > { %v268_v5 = vmul.f32 %v267_v2, %v261_v1  ;;  %v290_v10 = vstv %s263_s9  ;;  %p738_p6 = scmp.ne.s32.totalorder %s736_s19, %s737_s25  ;;  %p743_p2 = scmp.lt.s32.totalorder %s741_s27, %s737_s25 }
  0x4b   : > { %v295_v11 = vstv %s264_s11  ;;  %vm291_vm1 = vcmp.lt.s32.totalorder %v258_v8, %v290_v10 }
  0x4c   : > { %v269_v6 = vpack.c.bf16 %v268_v5, %v268_v5  ;;  %vm296_vm2 = vcmp.lt.s32.totalorder %v260_v9, %v295_v11  ;;  %p739_p13 = pnand %p738_p6, %p923_p11  ;;  %p744_p9 = por %p743_p2, %p742_p10 }
  0x4e   : > { %561 = vmatmul.msk.bf16.vlgmr.msra.gmra.mxu0 %vm270_vm0, %v269_v6  ;;  %p740_p3 = pneg %p739_p13 }
  0x50   : > { %p745_p0 = pnand %p744_p9, %p740_p3 }
  0xcb   : > { %v286_v12 = vpop.f32.mrf.mxu0 }
  0xcc   : > { %v294_v13 = vsel %vm291_vm1, %v286_v12, -10000000.0 }
  0xcd   : > { %v299_v14 = vsel %vm296_vm2, %v294_v13, -10000000.0 }
  0xce   : > { %v301_v15 = vsel %vm300_vm3, %v299_v14, -inf }
  0xcf   : > { %358 = vmax.xlane.f32.xlu0 %v301_v15  ;;  %v302_v16 = vrot.slane %v301_v15, 4 }
  0xd1   : > { %v303_v17 = vmax.f32 %v301_v15, %v302_v16 }
  0xd3   : > { %v304_v18 = vrot.slane %v303_v17, 2  ;;  %v288_v19 = vpop.f32.mrf.mxu0 }
  0xd5   : > { %v305_v20 = vmax.f32 %v303_v17, %v304_v18 }
  0xd7   : > { %v306_v21 = vrot.slane %v305_v20, 1 }
  0xd9   : > { %v307_v22 = vmax.f32 %v305_v20, %v306_v21 }
  0xdb   : > { %v308_v23 = vsub.f32 %v299_v14, %v307_v22 }
  0xdd   : > { %v309_v24 = vmul.f32 1.442695, %v308_v23 }
  0xdf   : > { %629 = vpow2.f32 %v309_v24 }
  0xe5   : > { %v630_v25 = vpop.eup %629 }
  0xe6   : > { %v311_v26 = vsel %vm300_vm3, %v630_v25, 0.0 }
  0xe7   : > { %v312_v27 = vrot.slane %v311_v26, 4 }
  0xe9   : > { %v313_v28 = vadd.f32 %v312_v27, %v311_v26 }
  0xeb   : > { %v314_v29 = vrot.slane %v313_v28, 2 }
  0xed   : > { %v315_v30 = vadd.f32 %v314_v29, %v313_v28 }
  0xef   : > { %v316_v31 = vrot.slane %v315_v30, 1 }
  0xf1   : > { %v317_v32 = vadd.f32 %v316_v31, %v315_v30 }
  0xf3   : > { %631 = vrcp.f32 %v317_v32 }
  0xf9   : > { %v632_v33 = vpop.eup %631 }
  0xfa   : > { %v319_v34 = vmul.f32 %v632_v33, %v630_v25 }
  0xfc   : > { %v320_v35 = vpack.c.bf16 %v319_v34, %v319_v34 }
  0xfe   : > { %321 = vxpose.xlu1.c.b16.start.end [1/1] (short) (narrow) %v320_v35, 16 }
 0x142   : > { %v359_v36 = vpop.xlane.xlu0 %358 }
 0x143   : > { %v360_v37 = vsub.f32 %v299_v14, %v359_v36 }
 0x145   : > { %v361_v38 = vmul.f32 1.442695, %v360_v37 }
 0x147   : > { %633 = vpow2.f32 %v361_v38 }
 0x14d   : > { %v634_v39 = vpop.eup %633 }
 0x14e   : > { %v363_v40 = vsel %vm300_vm3, %v634_v39, 0.0 }
 0x14f   : > { %364 = vadd.xlane.f32.xlu0 %v363_v40 }
 0x1aa   : > { %v329_v44 = vpop.trf.xlu1 }
 0x1ab   : > { %562 = vmatmul.msk.bf16.vlgmr.msra.gmra.mxu1 %vm300_vm3, %v329_v44 }
 0x1c2   : > { %v365_v45 = vpop.xlane.xlu0 %364 }
 0x1c3   : > { %635 = vrcp.f32 %v365_v45 }
 0x1c9   : > { %v636_v46 = vpop.eup %635 }
 0x1ca   : > { %v367_v47 = vmul.f32 %v636_v46, %v634_v39 }
 0x1cc   : > { %v368_v48 = vpack.c.bf16 %v367_v47, %v367_v47 }
 0x1ce   : > { %563 = vmatmul.msk.bf16.vlgmr.msra.gmra.mxu2 %vm300_vm3, %v368_v48 }
 0x228   : > { %v353_v49 = vpop.f32.mrf.mxu1 }
 0x229   : > { %357 = vst.msk [vmem:[%s254_s24] sm:$0xff] %vm270_vm0, %v353_v49 }
 0x22a   : > { %748 = shalt.err (!%p745_p0)
}
 0x22b   : > { %575 = dma.vmem_to_hbm [thread:$0]  (%p923_p11), %s421_s26, 128, %s423_s28, %s394_s23  }
 0x22c   : > { %s404_s12 = scalar_lea.hbm %s1067_s5, %s566_s15  ;;  %s247_s14 = scalar_lea.vmem [#allocation11], %s990_s20 }
 0x22d   : > { %s406_s21 = sshll.u32 %s247_s14, 4  ;;  %s408_s24 = sshll.u32 %s404_s12, 4  ;;  %s407_s21 = int_to_ptr.vmem [resolvable:$true] %s406_s21  ;;  %s409_s24 = int_to_ptr.hbm [resolvable:$true] %s408_s24 }
 0x22e   : > { %s389_s19 = scalar_lea.sflag [#allocation8], %s987_s18  ;;  %s763_s25 = sshra.s32 %s409_s24, 4  ;;  %s764_s25 = int_to_ptr.hbm [resolvable:$true] %s763_s25 }
 0x22f   : > { %s765_s2 = scalar_lea.hbm %s764_s25, 8  ;;  %s769_s15 = scalar_lea.hbm %s1067_s5, 16 }
 0x230   : > { %v355_v50 = vpop.f32.mrf.mxu1  ;;  %p766_p1 = scmp.ne.s32.totalorder %s764_s25, %s765_s2  ;;  %p770_p5 = scmp.lt.s32.totalorder %s764_s25, %s1067_s5 }
 0x231   : > { %p771_p8 = scmp.lt.s32.totalorder %s769_s15, %s765_s2 }
 0x232   : > { %p767_p4 = pnand %p766_p1, %p923_p11 }
 0x233   : > { %p772_p6 = por %p771_p8, %p770_p5 }
 0x234   : > { %p768_p7 = pneg %p767_p4 }
 0x236   : > { %p773_p13 = pnand %p772_p6, %p768_p7 }
 0x251   : > { %v383_v51 = vpop.f32.mrf.mxu2 }
 0x252   : > { %387 = vst.msk [vmem:[%s247_s14] sm:$0xff] %vm270_vm0, %v383_v51 }
 0x253   : > { %776 = shalt.err (!%p773_p13)
}
 0x254   : > { %574 = dma.vmem_to_hbm [thread:$0]  (%p923_p11), %s407_s21, 128, %s409_s24, %s389_s19  }
 0x259   : > { %v385_v52 = vpop.f32.mrf.mxu2 }
 0x25a PF: > { %s434_s18 = sand.u32 1, %s813_s0   ;;  %p1077_p3 = scmp.ge.s32.totalorder %s825_s8, 2 }
 0x25b   : > { %s435_s29 = scalar_lea.sflag [#allocation8], %s434_s18 }
 0x25c   : > { %p586_p10 = pnand %p1077_p3, %p927_p12 }
 0x25e   : > { %p587_p2 = pneg %p586_p10 }
 0x260   : > { %804 = dma.done.wait (%p587_p2), %s435_s29, 128  }
 0x261   : > { %806 = vsyncadd (%p587_p2), %s435_s29, 4294967168  ;;  %s445_s27 = scalar_lea.sflag [#allocation13], %s434_s18 }
 0x262   : > { %808 = dma.done.wait (%p587_p2), %s445_s27, 128  }
 0x263   : > { %810 = vsyncadd (%p587_p2), %s445_s27, 4294967168  ;;  %p40_p11 = scmp.ge.s32.totalorder %s898_s10, 4   ;;  %s1078_s0 = smov %s817_s1 }
 0x264   : > { %s1079_s1 = smov %s821_s7  ;;  %s1080_s7 = smov %s910_s13 }
 0x265   : > { %s1081_s8 = smov %s898_s10  ;;  %42 = sbr.rel (!%p40_p11) target bundleno = 17 (0x11), region = 103 }
 0x26a   :  { %451 = vsyncpa [#allocation7], 1 }
 0x26b   :  { %453 = vsyncpa [#allocation7 + $0x1], 1 }
 0x26c   :  { %454 = vsyncpa [#allocation10], 1 }
 0x26d   :  { %456 = vsyncpa [#allocation10 + $0x1], 1 }
 0x26e   :  { %457 = vsyncpa [#allocation8], 1 }
 0x26f   :  { %459 = vsyncpa [#allocation8 + $0x1], 1 }
 0x270   :  { %460 = vsyncpa [#allocation13], 1 }
 0x271   :  { %462 = vsyncpa [#allocation13 + $0x1], 1 }

</bundles_post_ra>
